<compile_context>
chip_gen: v6e
topology: v6e:2x2x1
jax: 0.10.0
libtpu: 0.0.40
codegen_flags: <defaults>
</compile_context>

<pallas_src>
import functools

import jax
import jax.numpy as jnp
from jax.experimental import pallas as pl
from jax.experimental.pallas import tpu as pltpu


_SUBLANE = 16    # row-tile multiple (safe for f32 and bf16 sublane packing)
_LANE = 128      # lane width — feature tiles are multiples of this
_RESIDENT_WEIGHT_BYTES = 6 << 20   # weight <= 6 MiB -> keep whole W, b in VMEM
_VMEM_SOFT_CAP = 40 << 20          # double-buffered footprint budget (fits v7x)


def _round_up(x, m):
    return ((x + m - 1) // m) * m


def _apply_activation(h, activation):
    if activation == "relu":
        return jnp.maximum(h, 0.0)
    return h  # "none"
    # TODO(synk): arbitrary Python activation callables (the nn.Module takes
    # any `activation`) are not lowered; only "relu"/"none" are supported.


def _node_apply_kernel_noacc(x_ref, w_ref, b_ref, o_ref, *, activation,
                             cast_x_bf16):
    """grid_k == 1 fast path: no accumulator scratch, single fused step."""
    x = x_ref[...]
    if cast_x_bf16:
        x = x.astype(jnp.bfloat16)            # in-kernel VPU cast, hidden under MXU
    h = jnp.dot(x, w_ref[...], preferred_element_type=jnp.float32)
    h = _apply_activation(h + b_ref[...], activation)
    o_ref[...] = h.astype(o_ref.dtype)


def _node_apply_kernel_acc(x_ref, w_ref, b_ref, o_ref, acc_ref, *, activation,
                           cast_x_bf16):
    """grid_k > 1: f32 VMEM accumulator across the K axis, bias folded into
    the k==0 init, bias-free ReLU epilogue at the last k step."""
    k = pl.program_id(2)

    @pl.when(k == 0)
    def _():
        acc_ref[...] = jnp.broadcast_to(b_ref[...], acc_ref.shape)

    x = x_ref[...]
    if cast_x_bf16:
        x = x.astype(jnp.bfloat16)
    acc_ref[...] += jnp.dot(x, w_ref[...], preferred_element_type=jnp.float32)

    @pl.when(k == pl.num_programs(2) - 1)
    def _():
        o_ref[...] = _apply_activation(acc_ref[...], activation).astype(o_ref.dtype)


def prepare_linear_params(weight, bias, *, use_bf16=True):
    """One-time conversion of PyTorch nn.Linear params to the kernel layout.
    weight: [out_feats, in_feats] -> w_t: [in_feats, out_feats] (bf16 if use_bf16)
    bias:   [out_feats]           -> b2:  [1, out_feats] (f32)
    Do this once at parameter load time, not per forward call."""
    w_t = weight.T
    if use_bf16 and w_t.dtype == jnp.float32:
        w_t = w_t.astype(jnp.bfloat16)
    return w_t, bias.reshape(1, -1).astype(jnp.float32)


def node_apply(x, w_t, b2, *, activation="relu", out_dtype=None,
               tile_n=512, tile_out=None, tile_k=None, use_bf16=True):
    """x: [N, in_feats] (f32 or bf16), w_t: [in_feats, out_feats]
    (pre-transposed), b2: [1, out_feats]. Returns activation(x @ w_t + b2)
    with shape [N, out_feats] and dtype out_dtype (default: x.dtype)."""
    if activation is None:
        activation = "none"
    if activation not in ("relu", "none"):
        raise ValueError(f"unsupported activation {activation!r}; "
                         "only 'relu' and 'none' are lowered in-kernel")

    N, K = x.shape
    Kw, O = w_t.shape
    assert K == Kw and b2.shape == (1, O)
    out_dtype = x.dtype if out_dtype is None else out_dtype

    # --- tile selection ------------------------------------------------------
    k_full = _round_up(K, _LANE)
    o_full = _round_up(O, _LANE)
    w_itemsize = (jnp.dtype(jnp.bfloat16).itemsize
                  if (use_bf16 and w_t.dtype == jnp.float32)
                  else w_t.dtype.itemsize)
    weight_resident = k_full * o_full * w_itemsize <= _RESIDENT_WEIGHT_BYTES

    if tile_k is None:
        tile_k = k_full if weight_resident else 512
    if tile_out is None:
        tile_out = o_full if weight_resident else 512
    tile_k = _round_up(min(tile_k, k_full), _LANE)
    tile_out = _round_up(min(tile_out, o_full), _LANE)

    tile_n = _round_up(max(min(tile_n, _round_up(N, _SUBLANE)), _SUBLANE), _SUBLANE)
    # Megacore (v7x has 2 TCs): make sure the 'parallel' row axis has >= 2 tiles.
    if _round_up(N, tile_n) // tile_n < 2 and N > _SUBLANE:
        tile_n = _round_up(-(-N // 2), _SUBLANE)

    def _footprint(tn):
        x_b = tn * tile_k * x.dtype.itemsize
        w_b = tile_k * tile_out * w_itemsize
        b_b = tile_out * 4
        o_b = tn * tile_out * jnp.dtype(out_dtype).itemsize
        acc_b = tn * tile_out * 4 if (_round_up(K, tile_k) // tile_k) > 1 else 0
        return 2 * (x_b + w_b + b_b + o_b) + acc_b

    while _footprint(tile_n) > _VMEM_SOFT_CAP and tile_n > _SUBLANE:
        tile_n = _round_up(max(tile_n // 2, _SUBLANE), _SUBLANE)

    n_pad = _round_up(N, tile_n)
    k_pad = _round_up(K, tile_k)
    o_pad = _round_up(O, tile_out)

    # --- padding (only when shapes are ragged; contributes 0 to the dot) -----
    if (n_pad, k_pad) != (N, K):
        x = jnp.pad(x, ((0, n_pad - N), (0, k_pad - K)))
    if (k_pad, o_pad) != (K, O):
        w_t = jnp.pad(w_t, ((0, k_pad - K), (0, o_pad - O)))
    if o_pad != O:
        b2 = jnp.pad(b2, ((0, 0), (0, o_pad - O)))

    # Weight/bias are small: cast once here (ideally pre-cast in
    # prepare_linear_params). x stays in its HBM dtype; bf16 cast is in-kernel.
    if use_bf16 and w_t.dtype == jnp.float32:
        w_t = w_t.astype(jnp.bfloat16)
    b2 = b2.astype(jnp.float32)
    cast_x_bf16 = bool(use_bf16 and x.dtype == jnp.float32)

    grid = (n_pad // tile_n, o_pad // tile_out, k_pad // tile_k)
    grid_k = grid[2]

    if grid_k == 1:
        kernel = functools.partial(_node_apply_kernel_noacc,
                                   activation=activation,
                                   cast_x_bf16=cast_x_bf16)
        scratch = []
    else:
        kernel = functools.partial(_node_apply_kernel_acc,
                                   activation=activation,
                                   cast_x_bf16=cast_x_bf16)
        scratch = [pltpu.VMEM((tile_n, tile_out), jnp.float32)]

    vmem_needed = _footprint(tile_n)
    vmem_limit = int(min(max(vmem_needed * 3 // 2 + (4 << 20), 32 << 20), 56 << 20))

    cost = pl.CostEstimate(
        flops=2 * n_pad * k_pad * o_pad,
        transcendentals=0,
        bytes_accessed=(x.size * x.dtype.itemsize
                        + w_t.size * w_t.dtype.itemsize
                        + b2.size * 4
                        + n_pad * o_pad * jnp.dtype(out_dtype).itemsize),
    )

    out = pl.pallas_call(
        kernel,
        out_shape=jax.ShapeDtypeStruct((n_pad, o_pad), out_dtype),
        grid_spec=pltpu.PrefetchScalarGridSpec(
            num_scalar_prefetch=0,
            grid=grid,
            in_specs=[
                pl.BlockSpec((tile_n, tile_k), lambda i, j, k: (i, k)),
                pl.BlockSpec((tile_k, tile_out), lambda i, j, k: (k, j)),
                pl.BlockSpec((1, tile_out), lambda i, j, k: (0, j)),
            ],
            out_specs=pl.BlockSpec((tile_n, tile_out), lambda i, j, k: (i, j)),
            scratch_shapes=scratch,
        ),
        compiler_params=pltpu.CompilerParams(
            dimension_semantics=("parallel", "parallel", "arbitrary"),
            vmem_limit_bytes=vmem_limit),
        cost_estimate=cost,
    )(x, w_t, b2)

    return out[:N, :O]


def node_apply_ref(x, weight, bias):
    return jnp.maximum(x @ weight.T + bias, 0.0)


if __name__ == "__main__":
    key = jax.random.PRNGKey(0)
    k1, k2, k3 = jax.random.split(key, 3)

    # small shapes: 8 "nodes", in_feats=32, out_feats=32
    N, in_feats, out_feats = 8, 32, 32
    x = jax.random.normal(k1, (N, in_feats), dtype=jnp.float32)
    bound = 1.0 / (in_feats ** 0.5)
    weight = jax.random.uniform(k2, (out_feats, in_feats),
                                minval=-bound, maxval=bound, dtype=jnp.float32)
    bias = jax.random.uniform(k3, (out_feats,),
                              minval=-bound, maxval=bound, dtype=jnp.float32)
    ref = node_apply_ref(x, weight, bias)

    # 1) exact-path check (f32 MXU inputs; validation only)
    w_t32, b2_32 = prepare_linear_params(weight, bias, use_bf16=False)
    out_f32 = jax.block_until_ready(node_apply(x, w_t32, b2_32, use_bf16=False))
    assert out_f32.shape == (N, out_feats)
    assert jnp.allclose(out_f32, ref, atol=1e-5, rtol=1e-5)

    # 2) fast path: bf16 weight + in-kernel bf16 cast of x, f32 accumulate,
    #    weight fully VMEM-resident (grid collapses to row tiles).
    w_t, b2 = prepare_linear_params(weight, bias, use_bf16=True)
    out_bf = jax.block_until_ready(node_apply(x, w_t, b2, use_bf16=True))
    assert jnp.allclose(out_bf, ref, atol=5e-2, rtol=5e-2)

    # 3) ragged / multi-tile check with explicit small tiles: exercises the
    #    K-accumulator kernel (grid_k > 1), padding, and the f32 bias fold.
    k4, k5, k6 = jax.random.split(jax.random.PRNGKey(1), 3)
    N2, in2, out2 = 300, 192, 160
    x2 = jax.random.normal(k4, (N2, in2), dtype=jnp.float32)
    bound2 = 1.0 / (in2 ** 0.5)
    weight2 = jax.random.uniform(k5, (out2, in2),
                                 minval=-bound2, maxval=bound2, dtype=jnp.float32)
    bias2 = jax.random.uniform(k6, (out2,),
                               minval=-bound2, maxval=bound2, dtype=jnp.float32)
    w2_t, b2_col = prepare_linear_params(weight2, bias2, use_bf16=True)
    ref2 = node_apply_ref(x2, weight2, bias2)
    out2_acc = jax.block_until_ready(
        node_apply(x2, w2_t, b2_col,
                   tile_n=128, tile_out=128, tile_k=128, use_bf16=True))
    assert out2_acc.shape == (N2, out2)
    assert jnp.allclose(out2_acc, ref2, atol=5e-2, rtol=5e-2)

    # 4) default auto-tiling on the same ragged problem: resident weight,
    #    no-acc kernel, >=2 row tiles (megacore), bf16 output dtype.
    out2_auto = jax.block_until_ready(
        node_apply(x2, w2_t, b2_col, use_bf16=True, out_dtype=jnp.bfloat16))
    assert out2_auto.shape == (N2, out2)
    assert jnp.allclose(out2_auto.astype(jnp.float32), ref2, atol=5e-2, rtol=5e-2)

    print("KERNEL_OK")
</pallas_src>

<mosaic_0001>
module attributes {stable_mosaic.version = 11 : i64} {
  func.func @_node_apply_kernel_noacc(%arg0: i32, %arg1: i32, %arg2: i32, %arg3: memref<16x128xf32, #tpu.memory_space<vmem>>, %arg4: memref<128x128xf32, #tpu.memory_space<vmem>>, %arg5: memref<1x128xf32, #tpu.memory_space<vmem>>, %arg6: memref<16x128xf32, #tpu.memory_space<vmem>>) attributes {dimension_semantics = [#tpu.dimension_semantics<parallel>, #tpu.dimension_semantics<parallel>, #tpu.dimension_semantics<arbitrary>], iteration_bounds = array<i64: 1, 1, 1>, scalar_prefetch = 0 : i64, scratch_operands = 0 : i64, tpu.core_type = #tpu.core_type<tc>, window_params = [{transform_indices = @transform_0, window_bounds = array<i64: 16, 128>}, {transform_indices = @transform_1, window_bounds = array<i64: 128, 128>}, {transform_indices = @transform_2, window_bounds = array<i64: 1, 128>}, {transform_indices = @transform_3, window_bounds = array<i64: 16, 128>}]} {
    %c0 = arith.constant 0 : index
    %c0_0 = arith.constant 0 : index
    %0 = vector.load %arg3[%c0, %c0_0] : memref<16x128xf32, #tpu.memory_space<vmem>>, vector<16x128xf32>
    %c0_1 = arith.constant 0 : index
    %c0_2 = arith.constant 0 : index
    %1 = vector.load %arg4[%c0_1, %c0_2] : memref<128x128xf32, #tpu.memory_space<vmem>>, vector<128x128xf32>
    %cst = arith.constant dense<0.000000e+00> : vector<16x128xf32>
    %2 = tpu.matmul %0, %1, %cst {dimension_numbers = #tpu.dot_dimension_numbers<[1], [0], [0], [1], [0, 0, 1, 1], [], []>} : vector<16x128xf32>, vector<128x128xf32>, vector<16x128xf32> -> vector<16x128xf32>
    %c0_3 = arith.constant 0 : index
    %c0_4 = arith.constant 0 : index
    %3 = vector.load %arg5[%c0_3, %c0_4] : memref<1x128xf32, #tpu.memory_space<vmem>>, vector<1x128xf32>
    %4 = vector.broadcast %3 : vector<1x128xf32> to vector<16x128xf32>
    %5 = arith.addf %2, %4 : vector<16x128xf32>
    %cst_5 = arith.constant 0.000000e+00 : f32
    %6 = vector.broadcast %cst_5 : f32 to vector<16x128xf32>
    %7 = arith.maximumf %5, %6 : vector<16x128xf32>
    %c0_6 = arith.constant 0 : index
    %c0_7 = arith.constant 0 : index
    %8 = vector.load %arg6[%c0_6, %c0_7] : memref<16x128xf32, #tpu.memory_space<vmem>>, vector<16x128xf32>
    tpu.vector_store %arg6[%c0_6, %c0_7], %7 {strides = array<i32>} : memref<16x128xf32, #tpu.memory_space<vmem>>, vector<16x128xf32>,
    return
  }
  func.func @transform_0(%arg0: i32, %arg1: i32, %arg2: i32) -> (i32, i32) {
    %c0_i32 = arith.constant 0 : i32
    return %arg0, %arg2 : i32, i32
  }
  func.func @transform_1(%arg0: i32, %arg1: i32, %arg2: i32) -> (i32, i32) {
    %c0_i32 = arith.constant 0 : i32
    return %arg2, %arg1 : i32, i32
  }
  func.func @transform_2(%arg0: i32, %arg1: i32, %arg2: i32) -> (i32, i32) {
    %c0_i32 = arith.constant 0 : i32
    %c0_i32_0 = arith.constant 0 : i32
    return %c0_i32, %arg1 : i32, i32
  }
  func.func @transform_3(%arg0: i32, %arg1: i32, %arg2: i32) -> (i32, i32) {
    %c0_i32 = arith.constant 0 : i32
    return %arg0, %arg1 : i32, i32
  }
}

</mosaic_0001>

<bundles_post_ra>
// kernel: tpu_custom_call.1
= control target key start
LH: loop header
LB: loop body
LE: loop exit
PB: predicated region body
PF: predicated region fallthrough
CT: control target
= control target key end

     0   :  { %8 = vsyncpa [#allocation3], 0  ;;  %s336_s0 = inlined_call_operand.hbm [shape: f32[16,128], index: 0, kind: input, shape index: {}]   ;;  %s337_s1 = inlined_call_operand.hbm [shape: f32[128,128], index: 1, kind: input, shape index: {}]   ;;  %s338_s2 = inlined_call_operand.vmem [shape: f32[1,128], index: 2, kind: input, shape index: {}]   ;;  %s339_s3 = inlined_call_operand.hbm [shape: f32[16,128], index: 3, kind: output, shape index: {}]  }
   0x1   :  { %9 = vsyncpa [#allocation6], 0 }
   0x2   :  { %10 = vsyncpa [#allocation4], 0  ;;  %s290_s12 = smov [#allocation2]  }
   0x3   :  { %s16_s13 = sshll.u32 %s290_s12, 4  ;;  %s17_s13 = int_to_ptr.vmem [resolvable:$true] %s16_s13 }
   0x4   :  { %s232_s14 = scalar_lea.vmem %s17_s13, 256  ;;  %p237_p1 = scmp.lt.s32.totalorder %s17_s13, %s17_s13 }
   0x5   :  { %p233_p0 = scmp.ne.s32.totalorder %s17_s13, %s232_s14  ;;  %p238_p2 = scmp.lt.s32.totalorder %s232_s14, %s232_s14 }
   0x7   :  { %p239_p3 = por %p238_p2, %p237_p1 }
   0x9   :  { %p240_p4 = pnand %p239_p3, %p233_p0 }
   0xb   :  { %243 = shalt.err (!%p240_p4)
}
   0xc   :  { %s291_s15 = smov 128   ;;  %s292_s16 = smov 8  }
   0xd   :  { %22 = dma.hbm_to_vmem [thread:$0]  %s336_s0, 256, %s17_s13, [#allocation3], %s291_s15, %s291_s15, %s292_s16  }
   0xe   :  { %s293_s19 = smov [#allocation5]  }
   0xf   :  { %s28_s20 = sshll.u32 %s293_s19, 4  ;;  %s29_s20 = int_to_ptr.vmem [resolvable:$true] %s28_s20 }
  0x10   :  { %s252_s21 = scalar_lea.vmem %s29_s20, 2048  ;;  %p257_p6 = scmp.lt.s32.totalorder %s29_s20, %s29_s20 }
  0x11   :  { %p253_p5 = scmp.ne.s32.totalorder %s29_s20, %s252_s21  ;;  %p258_p7 = scmp.lt.s32.totalorder %s252_s21, %s252_s21 }
  0x13   :  { %p259_p8 = por %p258_p7, %p257_p6 }
  0x15   :  { %p260_p9 = pnand %p259_p8, %p253_p5 }
  0x17   :  { %263 = shalt.err (!%p260_p9)
}
  0x18   :  { %34 = dma.hbm_to_vmem [thread:$0]  %s337_s1, 2048, %s29_s20, [#allocation6], %s291_s15, %s291_s15, %s292_s16  }
  0x19   :  { %284 = dma.done.wait [#allocation3], 256  }
  0x1a   :  { %285 = vsyncadd [#allocation3], 4294967040 }
  0x1b   :  { %286 = dma.done.wait [#allocation6], 2048  }
  0x1c   :  { %287 = vsyncadd [#allocation6], 4294965248  ;;  %v60_v0 = vld [vmem:[#allocation5 + $0x78] sm:$0xff]  ;;  %v59_v1 = vld [vmem:[#allocation5 + $0x70] sm:$0xff]  ;;  %s294_s24 = smov [#allocation7]  }
  0x1d   :  { %184 = vmatprep.subr.mxu0 %v60_v0  ;;  %v58_v2 = vld [vmem:[#allocation5 + $0x68] sm:$0xff]  ;;  %v57_v3 = vld [vmem:[#allocation5 + $0x60] sm:$0xff]  ;;  %v43_v4 = vld [vmem:[#allocation2] sm:$0xff]  ;;  %s152_s25 = sshll.u32 %s294_s24, 4  ;;  %s153_s25 = int_to_ptr.vmem [resolvable:$true] %s152_s25 }
  0x1e   :  { %185 = vmatpush3.msra.mxu0 %v60_v0  ;;  %v56_v5 = vld [vmem:[#allocation5 + $0x58] sm:$0xff]  ;;  %216 = vmatprep.mubr.f32.mxu0 %v43_v4  ;;  %v55_v6 = vld [vmem:[#allocation5 + $0x50] sm:$0xff]  ;;  %v54_v7 = vld [vmem:[#allocation5 + $0x48] sm:$0xff]  ;;  %s264_s26 = scalar_lea.vmem %s153_s25, 256  ;;  %p269_p11 = scmp.lt.s32.totalorder %s153_s25, %s153_s25 }
  0x1f   :  { %186 = vmatprep.subr.mxu0 %v59_v1  ;;  %v53_v8 = vld [vmem:[#allocation5 + $0x40] sm:$0xff]  ;;  %v52_v9 = vld [vmem:[#allocation5 + $0x38] sm:$0xff]  ;;  %v51_v10 = vld [vmem:[#allocation5 + $0x30] sm:$0xff]  ;;  %p265_p10 = scmp.ne.s32.totalorder %s153_s25, %s264_s26  ;;  %p270_p12 = scmp.lt.s32.totalorder %s264_s26, %s264_s26 }
  0x20   :  { %187 = vmatpush3.msra.mxu0 %v59_v1  ;;  %v50_v11 = vld [vmem:[#allocation5 + $0x28] sm:$0xff]  ;;  %v49_v12 = vld [vmem:[#allocation5 + $0x20] sm:$0xff]  ;;  %v48_v13 = vld [vmem:[#allocation5 + $0x18] sm:$0xff] }
  0x21   :  { %188 = vmatprep.subr.mxu0 %v58_v2  ;;  %v47_v14 = vld [vmem:[#allocation5 + $0x10] sm:$0xff]  ;;  %v46_v15 = vld [vmem:[#allocation5 + $0x8] sm:$0xff]  ;;  %v45_v16 = vld [vmem:[#allocation5] sm:$0xff]  ;;  %p271_p13 = por %p270_p12, %p269_p11 }
  0x22   :  { %189 = vmatpush3.msra.mxu0 %v58_v2  ;;  %v44_v17 = vld [vmem:[#allocation2 + $0x8] sm:$0xff]  ;;  %v165_v18 = vld [vmem:[%s338_s2] ss:$0 sm:$0xff] }
  0x23   :  { %190 = vmatprep.subr.mxu0 %v57_v3  ;;  %p272_p0 = pnand %p271_p13, %p265_p10 }
  0x24   :  { %191 = vmatpush3.msra.mxu0 %v57_v3 }
  0x25   :  { %192 = vmatprep.subr.mxu0 %v56_v5 }
  0x26   :  { %193 = vmatpush3.msra.mxu0 %v56_v5 }
  0x27   :  { %194 = vmatprep.subr.mxu0 %v55_v6 }
  0x28   :  { %195 = vmatpush3.msra.mxu0 %v55_v6 }
  0x29   :  { %196 = vmatprep.subr.mxu0 %v54_v7 }
  0x2a   :  { %197 = vmatpush3.msra.mxu0 %v54_v7 }
  0x2b   :  { %198 = vmatprep.subr.mxu0 %v53_v8 }
  0x2c   :  { %199 = vmatpush3.msra.mxu0 %v53_v8 }
  0x2d   :  { %200 = vmatprep.subr.mxu0 %v52_v9 }
  0x2e   :  { %201 = vmatpush3.msra.mxu0 %v52_v9 }
  0x2f   :  { %202 = vmatprep.subr.mxu0 %v51_v10 }
  0x30   :  { %203 = vmatpush3.msra.mxu0 %v51_v10 }
  0x31   :  { %204 = vmatprep.subr.mxu0 %v50_v11 }
  0x32   :  { %205 = vmatpush3.msra.mxu0 %v50_v11 }
  0x33   :  { %206 = vmatprep.subr.mxu0 %v49_v12 }
  0x34   :  { %207 = vmatpush3.msra.mxu0 %v49_v12 }
  0x35   :  { %208 = vmatprep.subr.mxu0 %v48_v13 }
  0x36   :  { %209 = vmatpush3.msra.mxu0 %v48_v13 }
  0x37   :  { %210 = vmatprep.subr.mxu0 %v47_v14 }
  0x38   :  { %211 = vmatpush3.msra.mxu0 %v47_v14 }
  0x39   :  { %212 = vmatprep.subr.mxu0 %v46_v15 }
  0x3a   :  { %213 = vmatpush3.msra.mxu0 %v46_v15 }
  0x3b   :  { %214 = vmatprep.subr.mxu0 %v45_v16 }
  0x3c   :  { %215 = vmatpush3.msra.mxu0 %v45_v16 }
  0x3d   :  { %217 = vmatmul.mubr.f32.vlgmr.msra.gmra.mxu0 %v44_v17 }
  0xfd   :  { %v218_v19 = vpop.f32.mrf.mxu0 }
  0xfe   :  { %v140_v20 = vadd.f32 %v218_v19, %v165_v18 }
  0xff   :  { %v134_v21 = vpop.f32.mrf.mxu0 }
 0x100   :  { %v144_v22 = vmax.f32 %v140_v20, 0.0  ;;  %v135_v23 = vadd.f32 %v165_v18, %v134_v21 }
 0x102   :  { %146 = vst [vmem:[#allocation7 + $0x8] sm:$0xff] %v144_v22  ;;  %v143_v24 = vmax.f32 %v135_v23, 0.0 }
 0x104   :  { %145 = vst [vmem:[#allocation7] sm:$0xff] %v143_v24 }
 0x105   :  { %275 = shalt.err (!%p272_p0)
}
 0x106   :  { %158 = dma.vmem_to_hbm [thread:$0]  %s153_s25, 256, %s339_s3, [#allocation4], %s291_s15, %s291_s15, %s292_s16  }
 0x107   :  { %288 = dma.done.wait [#allocation4], 256  }
 0x108   :  { %289 = vsyncadd [#allocation4], 4294967040 }
 0x109   :  { %162 = vsyncpa [#allocation3], 1 }
 0x10a   :  { %163 = vsyncpa [#allocation6], 1 }
 0x10b   :  { %164 = vsyncpa [#allocation4], 1 }

</bundles_post_ra>
